<compile_context>
chip_gen: v7x
topology: tpu7x:2x2x1
jax: 0.10.0
libtpu: 0.0.40
codegen_flags: <defaults>
</compile_context>

<pallas_src>
import jax
import jax.numpy as jnp
from jax.experimental import pallas as pl
from jax.experimental.pallas import tpu as pltpu

INPUT_SIZE = 64
HIDDEN_SIZE = 32
NEG_SLOPE = 0.01  # nn.LeakyReLU default


def _mlp_kernel(x_ref, w1_ref, b1_ref, w2t_ref, b2_ref, out_ref):
    # x_ref: (TB, N, D)   w1_ref: (D, H)   b1_ref: (1, H)
    # w2t_ref: (1, H)     b2_ref: (1, 1)   out_ref: (TB, 1)
    x = x_ref[...].astype(jnp.float32)          # f32 accumulation regardless of
                                                # the streamed input dtype
    # Reduction over the node axis (-2): (TB, N, D) -> (TB, D)
    graph_feature = jnp.sum(x, axis=-2)

    # Linear(input_size -> hidden_size) + LeakyReLU (MXU + VPU)
    h = jnp.dot(graph_feature, w1_ref[...], preferred_element_type=jnp.float32)
    h = h + b1_ref[...]                         # (1, H) broadcasts over batch
    h = jnp.where(h >= 0, h, NEG_SLOPE * h)

    # Linear(hidden_size -> 1) as a VPU multiply + lane reduce (skips a second,
    # massively under-filled, MXU pass).
    o = jnp.sum(h * w2t_ref[...], axis=-1, keepdims=True) + b2_ref[...]

    out_ref[...] = o.astype(out_ref.dtype)


def mlp_forward(x, w1, b1, w2, b2, *, block_b=2048, stream_dtype=jnp.bfloat16):
    """x: (B, N, D) -> (B,) float32.

    block_b:      batch tile size (clamped to B; kept a multiple of 8 when tiling).
    stream_dtype: dtype used to stream `x` from HBM (bf16 halves the DMA bytes
                  of this bandwidth-bound op).  Use None / jnp.float32 for the
                  bit-faithful f32 path.
    """
    B, N, D = x.shape
    H = w1.shape[1]
    assert w1.shape == (D, H)
    assert w2.shape == (H, 1)

    # --- batch tiling ------------------------------------------------------
    TB = min(int(block_b), B)
    if TB < B:
        TB = max(8, (TB // 8) * 8)          # keep (8, ...) tiling constraint on out
    B_pad = int(pl.cdiv(B, TB)) * TB
    if B_pad != B:
        x = jnp.pad(x, ((0, B_pad - B), (0, 0), (0, 0)))

    # --- optional bf16 streaming of the (large) input ----------------------
    if stream_dtype is not None and x.dtype != jnp.dtype(stream_dtype):
        x = x.astype(stream_dtype)

    b1_2d = b1.reshape(1, H).astype(jnp.float32)
    w2t = w2.reshape(1, H).astype(jnp.float32)   # (H,1) -> (1,H): same data order
    b2_2d = b2.reshape(1, 1).astype(jnp.float32)
    w1 = w1.astype(jnp.float32)

    grid = (B_pad // TB,)

    cost = pl.CostEstimate(
        flops=int(2 * B_pad * N * D + 2 * B_pad * D * H + 2 * B_pad * H),
        transcendentals=0,
        bytes_accessed=int(
            B_pad * N * D * jnp.dtype(x.dtype).itemsize   # dominant term
            + D * H * 4 + H * 4 + H * 4 + 4 + B_pad * 4
        ),
    )

    out = pl.pallas_call(
        _mlp_kernel,
        out_shape=jax.ShapeDtypeStruct((B_pad, 1), jnp.float32),
        grid_spec=pltpu.PrefetchScalarGridSpec(
            num_scalar_prefetch=0,
            grid=grid,
            in_specs=[
                # streamed input: tiled along batch, double-buffered by Pallas
                pl.BlockSpec((TB, N, D), lambda i: (i, 0, 0)),
                # weights / biases: constant index map -> stay VMEM-resident
                pl.BlockSpec((D, H), lambda i: (0, 0)),
                pl.BlockSpec((1, H), lambda i: (0, 0)),
                pl.BlockSpec((1, H), lambda i: (0, 0)),
                pl.BlockSpec((1, 1), lambda i: (0, 0)),
            ],
            out_specs=pl.BlockSpec((TB, 1), lambda i: (i, 0)),
        ),
        compiler_params=pltpu.CompilerParams(
            # independent batch tiles -> shardable across TCs (v7x megacore)
            dimension_semantics=("parallel",),
            # allow larger tiles than the scoped default (16 MiB on v5e)
            vmem_limit_bytes=64 * 1024 * 1024,
        ),
        cost_estimate=cost,
    )(x, w1, b1_2d, w2t, b2_2d)

    # TODO(synk): torch `.squeeze()` returns a 0-d scalar for B == 1; here the
    # wrapper always returns shape (B,).
    return out[:B, 0]


def reference_forward(x, w1, b1, w2, b2):
    gf = jnp.sum(x.astype(jnp.float32), axis=-2)
    h = gf @ w1 + b1
    h = jnp.where(h >= 0, h, NEG_SLOPE * h)
    o = h @ w2 + b2.reshape(1, 1)
    return o[:, 0]


if __name__ == "__main__":
    key = jax.random.PRNGKey(0)
    k_x, k_w1, k_b1, k_w2, k_b2 = jax.random.split(key, 5)

    B, N, D, H = 16, 16, INPUT_SIZE, HIDDEN_SIZE

    # Deterministic synthetic inputs / parameters.
    x = jax.random.normal(k_x, (B, N, D), dtype=jnp.float32)
    w1 = jax.random.normal(k_w1, (D, H), dtype=jnp.float32) * 0.1
    b1 = jax.random.normal(k_b1, (H,), dtype=jnp.float32) * 0.1
    w2 = jax.random.normal(k_w2, (H, 1), dtype=jnp.float32) * 0.1
    b2 = jax.random.normal(k_b2, (1,), dtype=jnp.float32) * 0.1

    ref = reference_forward(x, w1, b1, w2, b2)

    # 1) Exact-semantics f32 path, single batch tile.
    out_f32 = mlp_forward(x, w1, b1, w2, b2, stream_dtype=None)
    jax.block_until_ready(out_f32)
    assert out_f32.shape == (B,)
    assert jnp.allclose(out_f32, ref, atol=1e-4, rtol=1e-4), "f32 path mismatch"

    # 2) Exact-semantics f32 path with batch tiling exercised (grid of 2).
    out_tiled = mlp_forward(x, w1, b1, w2, b2, stream_dtype=None, block_b=8)
    jax.block_until_ready(out_tiled)
    assert jnp.allclose(out_tiled, ref, atol=1e-4, rtol=1e-4), "tiled path mismatch"

    # 3) Ragged batch (padding path): B=13 with TB=8 -> B_pad=16.
    x13, ref13 = x[:13], ref[:13]
    out_ragged = mlp_forward(x13, w1, b1, w2, b2, stream_dtype=None, block_b=8)
    jax.block_until_ready(out_ragged)
    assert out_ragged.shape == (13,)
    assert jnp.allclose(out_ragged, ref13, atol=1e-4, rtol=1e-4), "ragged path mismatch"

    # 4) Default performance config: bf16-streamed input (f32 accumulation).
    out_bf16 = mlp_forward(x, w1, b1, w2, b2)
    jax.block_until_ready(out_bf16)
    assert out_bf16.shape == (B,)
    assert jnp.allclose(out_bf16, ref, atol=6e-2, rtol=6e-2), "bf16-stream path mismatch"

    print("KERNEL_OK")
</pallas_src>

<mosaic_0001>
module attributes {stable_mosaic.version = 11 : i64} {
  func.func @_mlp_kernel(%arg0: i32, %arg1: memref<16x16x64xf32, #tpu.memory_space<vmem>>, %arg2: memref<64x32xf32, #tpu.memory_space<vmem>>, %arg3: memref<1x32xf32, #tpu.memory_space<vmem>>, %arg4: memref<1x32xf32, #tpu.memory_space<vmem>>, %arg5: memref<1x1xf32, #tpu.memory_space<vmem>>, %arg6: memref<16x1xf32, #tpu.memory_space<vmem>>) attributes {dimension_semantics = [#tpu.dimension_semantics<parallel>], iteration_bounds = array<i64: 1>, scalar_prefetch = 0 : i64, scratch_operands = 0 : i64, tpu.core_type = #tpu.core_type<tc>, window_params = [{transform_indices = @transform_0, window_bounds = array<i64: 16, 16, 64>}, {pipeline_mode = #tpu.pipeline_mode<synchronous>, transform_indices = @transform_1, window_bounds = array<i64: 64, 32>}, {pipeline_mode = #tpu.pipeline_mode<synchronous>, transform_indices = @transform_2, window_bounds = array<i64: 1, 32>}, {pipeline_mode = #tpu.pipeline_mode<synchronous>, transform_indices = @transform_3, window_bounds = array<i64: 1, 32>}, {pipeline_mode = #tpu.pipeline_mode<synchronous>, transform_indices = @transform_4, window_bounds = array<i64: 1, 1>}, {transform_indices = @transform_5, window_bounds = array<i64: 16, 1>}]} {
    %c0 = arith.constant 0 : index
    %c0_0 = arith.constant 0 : index
    %c0_1 = arith.constant 0 : index
    %0 = vector.load %arg1[%c0, %c0_0, %c0_1] : memref<16x16x64xf32, #tpu.memory_space<vmem>>, vector<16x16x64xf32>
    %cst = arith.constant dense<0.000000e+00> : vector<16x64xf32>
    %1 = vector.multi_reduction <add>, %0, %cst [1] : vector<16x16x64xf32> to vector<16x64xf32>
    %c0_2 = arith.constant 0 : index
    %c0_3 = arith.constant 0 : index
    %2 = vector.load %arg2[%c0_2, %c0_3] : memref<64x32xf32, #tpu.memory_space<vmem>>, vector<64x32xf32>
    %cst_4 = arith.constant dense<0.000000e+00> : vector<16x32xf32>
    %3 = tpu.matmul %1, %2, %cst_4 {dimension_numbers = #tpu.dot_dimension_numbers<[1], [0], [0], [1], [0, 0, 1, 1], [], []>} : vector<16x64xf32>, vector<64x32xf32>, vector<16x32xf32> -> vector<16x32xf32>
    %c0_5 = arith.constant 0 : index
    %c0_6 = arith.constant 0 : index
    %4 = vector.load %arg3[%c0_5, %c0_6] : memref<1x32xf32, #tpu.memory_space<vmem>>, vector<1x32xf32>
    %5 = vector.broadcast %4 : vector<1x32xf32> to vector<16x32xf32>
    %6 = arith.addf %3, %5 : vector<16x32xf32>
    %cst_7 = arith.constant 0.000000e+00 : f32
    %7 = vector.broadcast %cst_7 : f32 to vector<16x32xf32>
    %8 = arith.cmpf oge, %6, %7 : vector<16x32xf32>
    %cst_8 = arith.constant 0.00999999977 : f32
    %9 = vector.broadcast %cst_8 : f32 to vector<16x32xf32>
    %10 = arith.mulf %9, %6 : vector<16x32xf32>
    %11 = arith.select %8, %6, %10 : vector<16x32xi1>, vector<16x32xf32>
    %c0_9 = arith.constant 0 : index
    %c0_10 = arith.constant 0 : index
    %12 = vector.load %arg4[%c0_9, %c0_10] : memref<1x32xf32, #tpu.memory_space<vmem>>, vector<1x32xf32>
    %13 = vector.broadcast %12 : vector<1x32xf32> to vector<16x32xf32>
    %14 = arith.mulf %11, %13 : vector<16x32xf32>
    %cst_11 = arith.constant dense<0.000000e+00> : vector<16xf32>
    %15 = vector.multi_reduction <add>, %14, %cst_11 [1] : vector<16x32xf32> to vector<16xf32>
    %16 = vector.shape_cast %15 : vector<16xf32> to vector<16x1xf32>
    %c0_12 = arith.constant 0 : index
    %c0_13 = arith.constant 0 : index
    %17 = vector.load %arg5[%c0_12, %c0_13] : memref<1x1xf32, #tpu.memory_space<vmem>>, vector<1x1xf32>
    %18 = vector.broadcast %17 : vector<1x1xf32> to vector<16x1xf32>
    %19 = arith.addf %16, %18 : vector<16x1xf32>
    %c0_14 = arith.constant 0 : index
    %c0_15 = arith.constant 0 : index
    %20 = vector.load %arg6[%c0_14, %c0_15] : memref<16x1xf32, #tpu.memory_space<vmem>>, vector<16x1xf32>
    tpu.vector_store %arg6[%c0_14, %c0_15], %19 {strides = array<i32>} : memref<16x1xf32, #tpu.memory_space<vmem>>, vector<16x1xf32>,
    return
  }
  func.func @transform_0(%arg0: i32) -> (i32, i32, i32) {
    %c0_i32 = arith.constant 0 : i32
    %c0_i32_0 = arith.constant 0 : i32
    %c0_i32_1 = arith.constant 0 : i32
    return %arg0, %c0_i32, %c0_i32_0 : i32, i32, i32
  }
  func.func @transform_1(%arg0: i32) -> (i32, i32) {
    %c0_i32 = arith.constant 0 : i32
    %c0_i32_0 = arith.constant 0 : i32
    %c0_i32_1 = arith.constant 0 : i32
    return %c0_i32, %c0_i32_0 : i32, i32
  }
  func.func @transform_2(%arg0: i32) -> (i32, i32) {
    %c0_i32 = arith.constant 0 : i32
    %c0_i32_0 = arith.constant 0 : i32
    %c0_i32_1 = arith.constant 0 : i32
    return %c0_i32, %c0_i32_0 : i32, i32
  }
  func.func @transform_3(%arg0: i32) -> (i32, i32) {
    %c0_i32 = arith.constant 0 : i32
    %c0_i32_0 = arith.constant 0 : i32
    %c0_i32_1 = arith.constant 0 : i32
    return %c0_i32, %c0_i32_0 : i32, i32
  }
  func.func @transform_4(%arg0: i32) -> (i32, i32) {
    %c0_i32 = arith.constant 0 : i32
    %c0_i32_0 = arith.constant 0 : i32
    %c0_i32_1 = arith.constant 0 : i32
    return %c0_i32, %c0_i32_0 : i32, i32
  }
  func.func @transform_5(%arg0: i32) -> (i32, i32) {
    %c0_i32 = arith.constant 0 : i32
    %c0_i32_0 = arith.constant 0 : i32
    return %arg0, %c0_i32 : i32, i32
  }
}

</mosaic_0001>

<bundles_post_ra>
// kernel: tpu_custom_call.1
= control target key start
LH: loop header
LB: loop body
LE: loop exit
PB: predicated region body
PF: predicated region fallthrough
CT: control target
= control target key end

     0   :  { %s778_s0 = inlined_call_operand.hbm [shape: f32[16,16,64], index: 0, kind: input, shape index: {}]   ;;  %s779_s1 = inlined_call_operand.hbm [shape: f32[64,32], index: 1, kind: input, shape index: {}]   ;;  %s780_s2 = inlined_call_operand.hbm [shape: f32[1,32], index: 2, kind: input, shape index: {}]   ;;  %s781_s3 = inlined_call_operand.hbm [shape: f32[1,32], index: 3, kind: input, shape index: {}]   ;;  %s782_s4 = inlined_call_operand.<no memory space> [shape: f32[1,1], index: 4, kind: input, shape index: {}]   ;;  %s783_s5 = inlined_call_operand.hbm [shape: f32[16,1], index: 5, kind: output, shape index: {}]  }
   0x1   :  { %v10_v0 = vstv %s782_s4 }
   0x2   :  { %11 = vst [vmem:[#allocation2] sm:$0x1] %v10_v0 }
   0x3   :  { %12 = vsyncpa [#allocation4], 0 }
   0x4   :  { %13 = vsyncpa [#allocation7], 0 }
   0x5   :  { %14 = vsyncpa [#allocation10], 0 }
   0x6   :  { %15 = vsyncpa [#allocation5], 0  ;;  %s610_s20 = smov [#allocation6]   ;;  %s611_s22 = smov [#allocation3]  }
   0x7   :  { %s33_s21 = sshll.u32 %s610_s20, 4  ;;  %s21_s23 = sshll.u32 %s611_s22, 4  ;;  %s34_s21 = int_to_ptr.vmem [resolvable:$true] %s33_s21  ;;  %s650_s23 = int_to_ptr.vmem [resolvable:$true] %s21_s23 }
   0x8   :  { %s492_s26 = scalar_lea.hbm %s779_s1, 1024 }
   0x9   :  { %p493_p0 = scmp.ne.s32.totalorder %s779_s1, %s492_s26  ;;  %p496_p1 = scmp.lt.u32.totalorder %s492_s26, %s779_s1 }
   0xb   :  { %p498_p2 = pnand %p496_p1, %p493_p0 }
   0xd   :  { %501 = shalt.err (!%p498_p2)
}
   0xe   :  { %s502_s30 = scalar_lea.vmem %s34_s21, 1024  ;;  %p507_p4 = scmp.lt.s32.totalorder %s34_s21, %s34_s21 }
   0xf   :  { %p503_p3 = scmp.ne.s32.totalorder %s34_s21, %s502_s30  ;;  %p508_p5 = scmp.lt.s32.totalorder %s502_s30, %s502_s30 }
  0x11   :  { %p509_p6 = por %p508_p5, %p507_p4 }
  0x13   :  { %p510_p7 = pnand %p509_p6, %p503_p3 }
  0x15   :  { %513 = shalt.err (!%p510_p7)
}
  0x16   :  { %s612_s6 = smov 128   ;;  %s613_s7 = smov 8  }
  0x17   :  { %39 = dma.hbm_to_vmem [thread:$0]  %s779_s1, 1024, %s34_s21, [#allocation7], %s612_s6, %s612_s6, %s613_s7  }
  0x18   :  { %s514_s12 = scalar_lea.hbm %s778_s0, 4096 }
  0x19   :  { %p515_p8 = scmp.ne.s32.totalorder %s778_s0, %s514_s12  ;;  %p518_p9 = scmp.lt.u32.totalorder %s514_s12, %s778_s0 }
  0x1b   :  { %p520_p10 = pnand %p518_p9, %p515_p8 }
  0x1d   :  { %523 = shalt.err (!%p520_p10)
}
  0x1e   :  { %s524_s17 = scalar_lea.vmem %s650_s23, 4096  ;;  %p529_p12 = scmp.lt.s32.totalorder %s650_s23, %s650_s23 }
  0x1f   :  { %p525_p11 = scmp.ne.s32.totalorder %s650_s23, %s524_s17  ;;  %p530_p13 = scmp.lt.s32.totalorder %s524_s17, %s524_s17 }
  0x21   :  { %p531_p0 = por %p530_p13, %p529_p12 }
  0x23   :  { %p532_p1 = pnand %p531_p0, %p525_p11 }
  0x25   :  { %535 = shalt.err (!%p532_p1)
}
  0x26   :  { %27 = dma.hbm_to_vmem [thread:$0]  %s778_s0, 4096, %s650_s23, [#allocation4], %s612_s6, %s612_s6, %s613_s7  }
  0x27   :  { %s614_s19 = smov [#allocation8]   ;;  %s615_s21 = smov [#allocation9]  }
  0x28   :  { %s46_s20 = sshll.u32 %s614_s19, 4  ;;  %s56_s22 = sshll.u32 %s615_s21, 4  ;;  %s47_s20 = int_to_ptr.vmem [resolvable:$true] %s46_s20  ;;  %s57_s22 = int_to_ptr.vmem [resolvable:$true] %s56_s22 }
  0x29   :  { %s536_s26 = scalar_lea.hbm %s780_s2, 16 }
  0x2a   :  { %p537_p2 = scmp.ne.s32.totalorder %s780_s2, %s536_s26  ;;  %p540_p3 = scmp.lt.u32.totalorder %s536_s26, %s780_s2 }
  0x2c   :  { %p542_p4 = pnand %p540_p3, %p537_p2 }
  0x2e   :  { %545 = shalt.err (!%p542_p4)
}
  0x2f   :  { %s546_s0 = scalar_lea.vmem %s47_s20, 16  ;;  %s550_s23 = scalar_lea.vmem %s47_s20, 32 }
  0x30   :  { %p547_p5 = scmp.ne.s32.totalorder %s47_s20, %s546_s0  ;;  %p551_p6 = scmp.lt.s32.totalorder %s47_s20, %s47_s20 }
  0x31   :  { %p552_p7 = scmp.lt.s32.totalorder %s550_s23, %s546_s0 }
  0x33   :  { %p553_p8 = por %p552_p7, %p551_p6 }
  0x35   :  { %p554_p9 = pnand %p553_p8, %p547_p5 }
  0x37   :  { %557 = shalt.err (!%p554_p9)
}
  0x38   :  { %49 = dma.hbm_to_vmem [thread:$0]  %s780_s2, 16, %s47_s20, [#allocation7]  }
  0x39   :  { %s558_s11 = scalar_lea.hbm %s781_s3, 16 }
  0x3a   :  { %p559_p10 = scmp.ne.s32.totalorder %s781_s3, %s558_s11  ;;  %p562_p11 = scmp.lt.u32.totalorder %s558_s11, %s781_s3 }
  0x3c   :  { %p564_p12 = pnand %p562_p11, %p559_p10 }
  0x3e   :  { %567 = shalt.err (!%p564_p12)
}
  0x3f   :  { %s568_s16 = scalar_lea.vmem %s57_s22, 16  ;;  %s572_s17 = scalar_lea.vmem %s57_s22, 32 }
  0x40   :  { %p569_p13 = scmp.ne.s32.totalorder %s57_s22, %s568_s16  ;;  %p573_p0 = scmp.lt.s32.totalorder %s57_s22, %s57_s22 }
  0x41   :  { %p574_p1 = scmp.lt.s32.totalorder %s572_s17, %s568_s16 }
  0x43   :  { %p575_p2 = por %p574_p1, %p573_p0 }
  0x45   :  { %p576_p3 = pnand %p575_p2, %p569_p13 }
  0x47   :  { %579 = shalt.err (!%p576_p3)
}
  0x48   :  { %59 = dma.hbm_to_vmem [thread:$0]  %s781_s3, 16, %s57_s22, [#allocation10]  }
  0x49   :  { %602 = dma.done.wait [#allocation4], 4096  }
  0x4a   :  { %603 = vsyncadd [#allocation4], 4294963200 }
  0x4b   :  { %604 = dma.done.wait [#allocation7], 1040  }
  0x4c   :  { %605 = vsyncadd [#allocation7], 4294966256 }
  0x4d   :  { %606 = dma.done.wait [#allocation10], 16  }
  0x4e   :  { %607 = vsyncadd [#allocation10], 4294967280  ;;  %v251_v1 = vld [vmem:[#allocation6] sm:$0xff]  ;;  %v252_v2 = vld [vmem:[#allocation6 + $0x8] sm:$0xff]  ;;  %vm106_vm0 = vcmask 523264   ;;  %vm282_vm1 = vcmask 1041409  }
  0x4f   :  { %v253_v3 = vld [vmem:[#allocation6 + $0x10] sm:$0xff]  ;;  %v469_v4 = vpack.c.bf16 %v252_v2, %v251_v1  ;;  %v254_v5 = vld [vmem:[#allocation6 + $0x18] sm:$0xff]  ;;  %v255_v6 = vld [vmem:[#allocation6 + $0x20] sm:$0xff]  ;;  %vm284_vm2 = vcmask 1042434   ;;  %vm286_vm3 = vcmask 1043459   ;;  %vm288_vm4 = vcmask 1044484  }
  0x50   :  { %v256_v7 = vld [vmem:[#allocation6 + $0x28] sm:$0xff]  ;;  %v473_v8 = vpack.c.bf16 %v254_v5, %v253_v3  ;;  %v257_v9 = vld [vmem:[#allocation6 + $0x30] sm:$0xff]  ;;  %v258_v10 = vld [vmem:[#allocation6 + $0x38] sm:$0xff]  ;;  %vm290_vm5 = vcmask 1045509   ;;  %vm292_vm6 = vcmask 1046534   ;;  %vm294_vm7 = vcmask 1047559  }
  0x51   :  { %v74_v11 = vld [vmem:[#allocation3] sm:$0xff]  ;;  %470 = vmatprep.subr.bf16.mxu0 %v469_v4  ;;  %v477_v12 = vpack.c.bf16 %v256_v7, %v255_v6  ;;  %v75_v13 = vld [vmem:[#allocation3 + $0x8] sm:$0xff]  ;;  %v76_v14 = vld [vmem:[#allocation3 + $0x10] sm:$0xff]  ;;  %v712_v17 = vpack.c.bf16 %v258_v10, %v257_v9  ;;  %vm397_vm10 = vcmask 261120   ;;  %vm413_vm11 = vcmask 7168   ;;  %s616_s3 = smov [#allocation11]  }
  0x52   :  { %v77_v15 = vld [vmem:[#allocation3 + $0x18] sm:$0xff]  ;;  %v107_v16 = vsel %vm106_vm0, %v74_v11, 0.0  ;;  %472 = vmatpush3.bf16.msra.mxu0 %v469_v4  ;;  %v78_v18 = vld [vmem:[#allocation3 + $0x20] sm:$0xff]  ;;  %v79_v19 = vld [vmem:[#allocation3 + $0x28] sm:$0xff]  ;;  %v108_v21 = vsel %vm106_vm0, %v75_v13, 0.0  ;;  %v116_v22 = vsel %vm106_vm0, %v76_v14, 0.0 }
  0x53   :  { %v80_v20 = vld [vmem:[#allocation3 + $0x30] sm:$0xff]  ;;  %v117_v23 = vsel %vm106_vm0, %v77_v15, 0.0  ;;  %474 = vmatprep.subr.bf16.mxu0 %v473_v8  ;;  %v81_v24 = vld [vmem:[#allocation3 + $0x38] sm:$0xff]  ;;  %v82_v25 = vld [vmem:[#allocation3 + $0x40] sm:$0xff]  ;;  %v109_v27 = vadd.f32 %v108_v21, %v107_v16  ;;  %v125_v29 = vsel %vm106_vm0, %v78_v18, 0.0  ;;  %v126_v30 = vsel %vm106_vm0, %v79_v19, 0.0 }
  0x54   :  { %v83_v26 = vld [vmem:[#allocation3 + $0x48] sm:$0xff]  ;;  %v118_v28 = vadd.f32 %v117_v23, %v116_v22  ;;  %v84_v31 = vld [vmem:[#allocation3 + $0x50] sm:$0xff]  ;;  %v85_v32 = vld [vmem:[#allocation3 + $0x58] sm:$0xff]  ;;  %v127_v33 = vadd.f32 %v126_v30, %v125_v29  ;;  %v134_v34 = vsel %vm106_vm0, %v80_v20, 0.0  ;;  %v135_v35 = vsel %vm106_vm0, %v81_v24, 0.0  ;;  %s421_s18 = sshll.u32 %s616_s3, 4  ;;  %s422_s18 = int_to_ptr.vmem [resolvable:$true] %s421_s18 }
  0x55   :  { %v143_v36 = vsel %vm106_vm0, %v82_v25, 0.0  ;;  %v86_v37 = vld [vmem:[#allocation3 + $0x60] sm:$0xff]  ;;  %v87_v38 = vld [vmem:[#allocation3 + $0x68] sm:$0xff]  ;;  %v110_v39 = vrot.slane %v109_v27, 4  ;;  %v136_v41 = vadd.f32 %v135_v35, %v134_v34  ;;  %v144_v42 = vsel %vm106_vm0, %v83_v26, 0.0  ;;  %v88_v47 = vld [vmem:[#allocation3 + $0x70] sm:$0xff]  ;;  %p585_p5 = scmp.lt.s32.totalorder %s422_s18, %s422_s18 }
  0x56   :  { %v119_v40 = vrot.slane %v118_v28, 4  ;;  %476 = vmatpush3.bf16.msra.mxu0 %v473_v8  ;;  %v128_v43 = vrot.slane %v127_v33, 4  ;;  %v145_v44 = vadd.f32 %v144_v42, %v143_v36  ;;  %v152_v45 = vsel %vm106_vm0, %v84_v31, 0.0  ;;  %v89_v56 = vld [vmem:[#allocation3 + $0x78] sm:$0xff]  ;;  %v90_v18 = vld [vmem:[#allocation3 + $0x80] sm:$0xff]  ;;  %s580_s19 = scalar_lea.vmem %s422_s18, 256 }
  0x57   :  { %v153_v46 = vsel %vm106_vm0, %v85_v32, 0.0  ;;  %478 = vmatprep.subr.bf16.mxu0 %v477_v12  ;;  %v111_v48 = vadd.f32 %v110_v39, %v109_v27  ;;  %v137_v50 = vrot.slane %v136_v41, 4  ;;  %v161_v54 = vsel %vm106_vm0, %v86_v37, 0.0  ;;  %v91_v27 = vld [vmem:[#allocation3 + $0x88] sm:$0xff]  ;;  %v93_v36 = vld [vmem:[#allocation3 + $0x98] sm:$0xff]  ;;  %v94_v37 = vld [vmem:[#allocation3 + $0xa0] sm:$0xff]  ;;  %p581_p4 = scmp.ne.s32.totalorder %s422_s18, %s580_s19  ;;  %p586_p6 = scmp.lt.s32.totalorder %s580_s19, %s580_s19 }
  0x58   :  { %v120_v49 = vadd.f32 %v119_v40, %v118_v28  ;;  %v154_v51 = vadd.f32 %v153_v46, %v152_v45  ;;  %v129_v52 = vadd.f32 %v128_v43, %v127_v33  ;;  %v146_v53 = vrot.slane %v145_v44, 4  ;;  %v92_v28 = vld [vmem:[#allocation3 + $0x90] sm:$0xff] }
  0x59   :  { %v162_v55 = vsel %vm106_vm0, %v87_v38, 0.0  ;;  %v112_v57 = vrot.slane %v111_v48, 2  ;;  %v138_v59 = vadd.f32 %v137_v50, %v136_v41  ;;  %v170_v0 = vsel %vm106_vm0, %v88_v47, 0.0  ;;  %v95_v38 = vld [vmem:[#allocation3 + $0xa8] sm:$0xff]  ;;  %v96_v46 = vld [vmem:[#allocation3 + $0xb0] sm:$0xff]  ;;  %v97_v47 = vld [vmem:[#allocation3 + $0xb8] sm:$0xff]  ;;  %p587_p7 = por %p586_p6, %p585_p5 }
  0x5a   :  { %v121_v58 = vrot.slane %v120_v49, 2  ;;  %v155_v60 = vrot.slane %v154_v51, 4  ;;  %480 = vmatpush3.bf16.msra.mxu0 %v477_v12  ;;  %v130_v61 = vrot.slane %v129_v52, 2  ;;  %v147_v62 = vadd.f32 %v146_v53, %v145_v44 }
  0x5b   :  { %v163_v63 = vadd.f32 %v162_v55, %v161_v54  ;;  %482 = vmatprep.subr.bf16.mxu0 %v712_v17  ;;  %v113_v1 = vadd.f32 %v112_v57, %v111_v48  ;;  %v139_v3 = vrot.slane %v138_v59, 2  ;;  %v171_v8 = vsel %vm106_vm0, %v89_v56, 0.0  ;;  %v98_v48 = vld [vmem:[#allocation3 + $0xc0] sm:$0xff]  ;;  %v99_v56 = vld [vmem:[#allocation3 + $0xc8] sm:$0xff]  ;;  %v100_v57 = vld [vmem:[#allocation3 + $0xd0] sm:$0xff]  ;;  %p588_p8 = pnand %p587_p7, %p581_p4 }
  0x5c   :  { %v122_v2 = vadd.f32 %v121_v58, %v120_v49  ;;  %v156_v4 = vadd.f32 %v155_v60, %v154_v51  ;;  %v131_v5 = vadd.f32 %v130_v61, %v129_v52  ;;  %v148_v6 = vrot.slane %v147_v62, 2 }
  0x5d   :  { %v164_v7 = vrot.slane %v163_v63, 4  ;;  %v114_v9 = vrot.slane %v113_v1, 1  ;;  %v140_v11 = vadd.f32 %v139_v3, %v138_v59  ;;  %v172_v16 = vadd.f32 %v171_v8, %v170_v0  ;;  %v102_v3 = vld [vmem:[#allocation3 + $0xe0] sm:$0xff] }
  0x5e   :  { %v123_v10 = vrot.slane %v122_v2, 1  ;;  %v157_v12 = vrot.slane %v156_v4, 2  ;;  %484 = vmatpush3.bf16.msra.mxu0 %v712_v17  ;;  %v132_v13 = vrot.slane %v131_v5, 1  ;;  %v149_v14 = vadd.f32 %v148_v6, %v147_v62 }
  0x5f   :  { %v165_v15 = vadd.f32 %v164_v7, %v163_v63  ;;  %v115_v19 = vadd.f32 %v114_v9, %v113_v1  ;;  %v141_v21 = vrot.slane %v140_v11, 1  ;;  %v173_v26 = vrot.slane %v172_v16, 4 }
  0x60   :  { %v124_v20 = vadd.f32 %v123_v10, %v122_v2  ;;  %v158_v22 = vadd.f32 %v157_v12, %v156_v4  ;;  %v133_v23 = vadd.f32 %v132_v13, %v131_v5  ;;  %v150_v24 = vrot.slane %v149_v14, 1  ;;  %v101_v2 = vld [vmem:[#allocation3 + $0xd8] sm:$0xff] }
  0x61   :  { %v166_v25 = vrot.slane %v165_v15, 2  ;;  %v142_v29 = vadd.f32 %v141_v21, %v140_v11  ;;  %v179_v17 = vsel %vm106_vm0, %v90_v18, 0.0  ;;  %v174_v34 = vadd.f32 %v173_v26, %v172_v16  ;;  %v103_v11 = vld [vmem:[#allocation3 + $0xe8] sm:$0xff]  ;;  %v104_v21 = vld [vmem:[#allocation3 + $0xf0] sm:$0xff] }
  0x62   :  { %v159_v30 = vrot.slane %v158_v22, 1  ;;  %v283_v31 = vsel %vm282_vm1, %v124_v20, %v115_v19  ;;  %v151_v32 = vadd.f32 %v150_v24, %v149_v14  ;;  %v180_v41 = vsel %vm106_vm0, %v91_v27, 0.0 }
  0x63   :  { %v167_v33 = vadd.f32 %v166_v25, %v165_v15  ;;  %v285_v35 = vsel %vm284_vm2, %v133_v23, %v283_v31  ;;  %v188_v42 = vsel %vm106_vm0, %v92_v28, 0.0  ;;  %v175_v44 = vrot.slane %v174_v34, 2 }
  0x64   :  { %v160_v39 = vadd.f32 %v159_v30, %v158_v22  ;;  %v287_v40 = vsel %vm286_vm3, %v142_v29, %v285_v35  ;;  %v181_v49 = vadd.f32 %v180_v41, %v179_v17  ;;  %v189_v51 = vsel %vm106_vm0, %v93_v36, 0.0  ;;  %v105_v29 = vld [vmem:[#allocation3 + $0xf8] sm:$0xff] }
  0x65   :  { %v168_v43 = vrot.slane %v167_v33, 1  ;;  %v289_v45 = vsel %vm288_vm4, %v151_v32, %v287_v40  ;;  %v197_v52 = vsel %vm106_vm0, %v94_v37, 0.0  ;;  %v198_v53 = vsel %vm106_vm0, %v95_v38, 0.0 }
  0x66   :  { %v291_v50 = vsel %vm290_vm5, %v160_v39, %v289_v45  ;;  %v176_v55 = vadd.f32 %v175_v44, %v174_v34  ;;  %v182_v58 = vrot.slane %v181_v49, 4  ;;  %v190_v59 = vadd.f32 %v189_v51, %v188_v42 }
  0x67   :  { %v169_v54 = vadd.f32 %v168_v43, %v167_v33  ;;  %v199_v60 = vadd.f32 %v198_v53, %v197_v52  ;;  %v206_v61 = vsel %vm106_vm0, %v96_v46, 0.0  ;;  %v207_v62 = vsel %vm106_vm0, %v97_v47, 0.0 }
  0x68   :  { %v215_v63 = vsel %vm106_vm0, %v98_v48, 0.0  ;;  %v177_v0 = vrot.slane %v176_v55, 1  ;;  %v183_v4 = vadd.f32 %v182_v58, %v181_v49  ;;  %v191_v5 = vrot.slane %v190_v59, 4 }
  0x69   :  { %v293_v1 = vsel %vm292_vm6, %v169_v54, %v291_v50  ;;  %v200_v6 = vrot.slane %v199_v60, 4  ;;  %v208_v7 = vadd.f32 %v207_v62, %v206_v61  ;;  %v216_v8 = vsel %vm106_vm0, %v99_v56, 0.0 }
  0x6a   :  { %v224_v9 = vsel %vm106_vm0, %v100_v57, 0.0  ;;  %v178_v10 = vadd.f32 %v177_v0, %v176_v55  ;;  %v184_v12 = vrot.slane %v183_v4, 2  ;;  %v192_v13 = vadd.f32 %v191_v5, %v190_v59 }
  0x6b   :  { %v217_v14 = vadd.f32 %v216_v8, %v215_v63  ;;  %v201_v15 = vadd.f32 %v200_v6, %v199_v60  ;;  %v209_v16 = vrot.slane %v208_v7, 4  ;;  %v225_v18 = vsel %vm106_vm0, %v101_v2, 0.0 }
  0x6c   :  { %v233_v19 = vsel %vm106_vm0, %v102_v3, 0.0  ;;  %v295_v20 = vsel %vm294_vm7, %v178_v10, %v293_v1  ;;  %v185_v22 = vadd.f32 %v184_v12, %v183_v4  ;;  %v193_v23 = vrot.slane %v192_v13, 2 }
  0x6d   :  { %v218_v24 = vrot.slane %v217_v14, 4  ;;  %466 = vmatprep.mubr.msk.f32.mxu0 %vm106_vm0, %v295_v20  ;;  %v202_v25 = vrot.slane %v201_v15, 2  ;;  %v210_v26 = vadd.f32 %v209_v16, %v208_v7  ;;  %v226_v27 = vadd.f32 %v225_v18, %v224_v9 }
  0x6e   :  { %v234_v28 = vsel %vm106_vm0, %v103_v11, 0.0  ;;  %v186_v30 = vrot.slane %v185_v22, 1  ;;  %v194_v31 = vadd.f32 %v193_v23, %v192_v13  ;;  %v242_v36 = vsel %vm106_vm0, %v104_v21, 0.0  ;;  %v435_v11 = vld [vmem:[#allocation8] ss:$0 sm:$0xff] }
  0x6f   :  { %v219_v17 = vadd.f32 %v218_v24, %v217_v14  ;;  %v235_v32 = vadd.f32 %v234_v28, %v233_v19  ;;  %v203_v33 = vadd.f32 %v202_v25, %v201_v15  ;;  %v211_v34 = vrot.slane %v210_v26, 2  ;;  %v438_v19 = vld [vmem:[#allocation9] ss:$0 sm:$0xff] }
  0x70   :  { %v227_v35 = vrot.slane %v226_v27, 4  ;;  %v187_v37 = vadd.f32 %v186_v30, %v185_v22  ;;  %v195_v38 = vrot.slane %v194_v31, 1  ;;  %v243_v44 = vsel %vm106_vm0, %v105_v29, 0.0 }
  0x71   :  { %v220_v39 = vrot.slane %v219_v17, 2  ;;  %v236_v40 = vrot.slane %v235_v32, 4  ;;  %v204_v41 = vrot.slane %v203_v33, 1  ;;  %v212_v42 = vadd.f32 %v211_v34, %v210_v26  ;;  %v439_v26 = vld [vmem:[#allocation2] ss:$0 sm:$0xff] }
  0x72   :  { %v228_v43 = vadd.f32 %v227_v35, %v226_v27  ;;  %v196_v45 = vadd.f32 %v195_v38, %v194_v31  ;;  %v244_v48 = vadd.f32 %v243_v44, %v242_v36 }
  0x73   :  { %v221_v46 = vadd.f32 %v220_v39, %v219_v17  ;;  %v237_v47 = vadd.f32 %v236_v40, %v235_v32  ;;  %v205_v49 = vadd.f32 %v204_v41, %v203_v33  ;;  %v213_v50 = vrot.slane %v212_v42, 1 }
  0x74   :  { %v229_v51 = vrot.slane %v228_v43, 2  ;;  %v245_v54 = vrot.slane %v244_v48, 4  ;;  %v296_v55 = vsel %vm282_vm1, %v196_v45, %v187_v37 }
  0x75   :  { %v222_v52 = vrot.slane %v221_v46, 1  ;;  %v238_v53 = vrot.slane %v237_v47, 2  ;;  %v214_v56 = vadd.f32 %v213_v50, %v212_v42  ;;  %v297_v58 = vsel %vm284_vm2, %v205_v49, %v296_v55 }
  0x76   :  { %v230_v57 = vadd.f32 %v229_v51, %v228_v43  ;;  %v246_v61 = vadd.f32 %v245_v54, %v244_v48 }
  0x77   :  { %v223_v59 = vadd.f32 %v222_v52, %v221_v46  ;;  %v239_v60 = vadd.f32 %v238_v53, %v237_v47  ;;  %v298_v63 = vsel %vm286_vm3, %v214_v56, %v297_v58 }
  0x78   :  { %v231_v62 = vrot.slane %v230_v57, 1  ;;  %v247_v1 = vrot.slane %v246_v61, 2 }
  0x79   :  { %v240_v0 = vrot.slane %v239_v60, 1  ;;  %v299_v2 = vsel %vm288_vm4, %v223_v59, %v298_v63 }
  0x7a   :  { %v232_v3 = vadd.f32 %v231_v62, %v230_v57  ;;  %v248_v5 = vadd.f32 %v247_v1, %v246_v61 }
  0x7b   :  { %v241_v4 = vadd.f32 %v240_v0, %v239_v60 }
  0x7c   :  { %v300_v6 = vsel %vm290_vm5, %v232_v3, %v299_v2  ;;  %v249_v7 = vrot.slane %v248_v5, 1 }
  0x7d   :  { %v301_v8 = vsel %vm292_vm6, %v241_v4, %v300_v6 }
  0x7e   :  { %v250_v9 = vadd.f32 %v249_v7, %v248_v5 }
  0x80   :  { %v302_v10 = vsel %vm294_vm7, %v250_v9, %v301_v8 }
  0x81   :  { %467 = vmatmul.mubr.msk.f32.vlgmr.msra.gmra.mrb[0].mxu0 %vm106_vm0, %v302_v10 }
 0x154   :  { %v468_v12 = vpop.f32.mrb[0].mxu0 }
 0x155   :  { %v379_v13 = vadd.f32 %v468_v12, %v435_v11  ;;  %v373_v14 = vpop.f32.mrb[1].mxu0 }
 0x156   :  { %v374_v15 = vadd.f32 %v435_v11, %v373_v14 }
 0x157   :  { %vm383_vm8 = vcmp.ge.f32.partialorder %v379_v13, 0.0  ;;  %v385_v16 = vmul.f32 0.01, %v379_v13 }
 0x158   :  { %v384_v18 = vmul.f32 0.01, %v374_v15  ;;  %vm382_vm9 = vcmp.ge.f32.partialorder %v374_v15, 0.0 }
 0x159   :  { %v387_v21 = vsel %vm383_vm8, %v379_v13, %v385_v16 }
 0x15a   :  { %v386_v20 = vsel %vm382_vm9, %v374_v15, %v384_v18  ;;  %v396_v24 = vmul.f32 %v438_v19, %v387_v21 }
 0x15b   :  { %v395_v22 = vmul.f32 %v438_v19, %v386_v20 }
 0x15c   :  { %v401_v25 = vsel %vm397_vm10, %v396_v24, 0.0 }
 0x15d   :  { %v398_v23 = vsel %vm397_vm10, %v395_v22, 0.0 }
 0x15e   :  { %399 = vadd.xlane.f32.xlu0 %v398_v23 }
 0x162   :  { %402 = vadd.xlane.f32.xlu0 %v401_v25 }
 0x1eb   :  { %v400_v27 = vpop.xlane.xlu0 %399 }
 0x1ec   :  { %v411_v28 = vadd.f32 %v439_v26, %v400_v27 }
 0x1ee   :  { %414 = vst.msk [vmem:[#allocation11] sm:$0xff] %vm413_vm11, %v411_v28 }
 0x1ef   :  { %v403_v29 = vpop.xlane.xlu0 %402 }
 0x1f0   :  { %v412_v30 = vadd.f32 %v439_v26, %v403_v29 }
 0x1f2   :  { %415 = vst.msk [vmem:[#allocation11 + $0x8] sm:$0xff] %vm413_vm11, %v412_v30 }
 0x1f3   :  { %591 = shalt.err (!%p588_p8)
}
 0x1f4   :  { %s592_s22 = scalar_lea.hbm %s783_s5, 256 }
 0x1f5   :  { %p593_p9 = scmp.ne.s32.totalorder %s783_s5, %s592_s22  ;;  %p596_p10 = scmp.lt.u32.totalorder %s592_s22, %s783_s5 }
 0x1f7   :  { %p598_p11 = pnand %p596_p10, %p593_p9 }
 0x1f9   :  { %601 = shalt.err (!%p598_p11)
}
 0x1fa   :  { %427 = dma.vmem_to_hbm [thread:$0]  %s422_s18, 256, %s783_s5, [#allocation5], %s612_s6, %s612_s6, %s613_s7  }
 0x1fb   :  { %608 = dma.done.wait [#allocation5], 256  }
 0x1fc   :  { %609 = vsyncadd [#allocation5], 4294967040 }
 0x1fd   :  { %431 = vsyncpa [#allocation4], 1 }
 0x1fe   :  { %432 = vsyncpa [#allocation7], 1 }
 0x1ff   :  { %433 = vsyncpa [#allocation10], 1 }
 0x200   :  { %434 = vsyncpa [#allocation5], 1 }

</bundles_post_ra>
